<compile_context>
chip_gen: v7x
topology: tpu7x:2x2x1
jax: 0.10.0
libtpu: 0.0.40
codegen_flags: <defaults>
</compile_context>

<pallas_src>
import jax
import jax.numpy as jnp
from jax.experimental import pallas as pl
from jax.experimental.pallas import tpu as pltpu


def _round_up(x, m):
    return (x + m - 1) // m * m


def _mlp_kernel(x_ref, w1_ref, b1_ref, w2_ref, b2_ref, w3_ref, b3_ref, o_ref):
    """Fused 3-layer MLP on one batch tile; all operands resident in VMEM.

    x_ref: (bm, F)    w1: (F, H1)   b1: (1, H1)
                      w2: (H1, H2)  b2: (1, H2)
                      w3: (1, H2)   b3: (1, 1)
    o_ref: (1, bm)  -- lane-dense output row (one scalar per batch row).
    """
    x = x_ref[...]
    # fc1 + sigmoid (f32 accumulation on the MXU, elementwise math in f32).
    h1 = jnp.dot(x, w1_ref[...], preferred_element_type=jnp.float32) + b1_ref[...]
    h1 = jax.nn.sigmoid(h1)
    # fc2 + sigmoid.
    h1 = h1.astype(w2_ref.dtype)
    h2 = jnp.dot(h1, w2_ref[...], preferred_element_type=jnp.float32) + b2_ref[...]
    h2 = jax.nn.sigmoid(h2)
    # fc_last: single output column -> VPU multiply + lane reduction instead of
    # an N=1 MXU matmul (MXU pass would produce one useful column).
    y = jnp.sum(h2 * w3_ref[...], axis=-1)                       # (bm,)
    o_ref[...] = (y[None, :] + b3_ref[...]).astype(o_ref.dtype)  # (1, bm)


def linear_mlp_forward(x, params, *, block_m=512, compute_dtype=None):
    """Forward pass of `Linear`. x: (B, feature_dim) f32 -> (B, 1) f32.

    Dropout is the eval-mode identity (inference).
    compute_dtype=jnp.bfloat16 optionally casts x/W1/W2 for the DMA + matmuls
    (f32 accumulation kept inside the kernel).
    """
    w1, b1, w2, b2, w3, b3 = params
    B, F = x.shape
    H1 = w1.shape[1]   # 2 * embed_dim
    H2 = w2.shape[1]   # embed_dim

    if compute_dtype is not None:
        x = x.astype(compute_dtype)
        w1 = w1.astype(compute_dtype)
        w2 = w2.astype(compute_dtype)

    # Large batch tiles amortize the ~0.35us per-grid-step overhead; tiles stay
    # sublane (8) aligned and batch is zero-padded up to a tile multiple.
    # VMEM is nowhere near a constraint at these dims (even on v7x's 64 MiB).
    bm = min(block_m, _round_up(B, 8))
    bm = _round_up(bm, 8)
    b_pad = _round_up(B, bm)
    if b_pad != B:
        x = jnp.pad(x, ((0, b_pad - B), (0, 0)))
    num_tiles = b_pad // bm

    # Lane-dense output: one (1, bm) row per tile (unmasked full-lane stores);
    # reshaped back to (B, 1) below (free layout plumbing in the wrapper).
    out = pl.pallas_call(
        _mlp_kernel,
        out_shape=jax.ShapeDtypeStruct((num_tiles, bm), jnp.float32),
        grid_spec=pltpu.PrefetchScalarGridSpec(
            num_scalar_prefetch=0,
            grid=(num_tiles,),
            in_specs=[
                pl.BlockSpec((bm, F), lambda i: (i, 0)),    # x tile
                # Constant index_maps -> weights/biases stay VMEM-resident
                # across the whole grid (no per-step re-DMA).
                pl.BlockSpec((F, H1), lambda i: (0, 0)),    # W1 (full)
                pl.BlockSpec((1, H1), lambda i: (0, 0)),    # b1
                pl.BlockSpec((H1, H2), lambda i: (0, 0)),   # W2 (full)
                pl.BlockSpec((1, H2), lambda i: (0, 0)),    # b2
                pl.BlockSpec((1, H2), lambda i: (0, 0)),    # W3 (row)
                pl.BlockSpec((1, 1), lambda i: (0, 0)),     # b3
            ],
            out_specs=pl.BlockSpec((1, bm), lambda i: (i, 0)),
        ),
        compiler_params=pltpu.CompilerParams(
            dimension_semantics=("parallel",)),   # batch axis shards across TCs (v7x)
    )(x, w1, b1, w2, b2, w3, b3)

    return out.reshape(b_pad, 1)[:B]


def init_params(key, feature_dim, embed_dim):
    """Deterministic init matching `_init_weights`: W ~ N(0, 0.01), b = 0."""
    k1, k2, k3 = jax.random.split(key, 3)
    std = 0.01
    w1 = std * jax.random.normal(k1, (feature_dim, 2 * embed_dim), jnp.float32)
    b1 = jnp.zeros((1, 2 * embed_dim), jnp.float32)
    w2 = std * jax.random.normal(k2, (2 * embed_dim, embed_dim), jnp.float32)
    b2 = jnp.zeros((1, embed_dim), jnp.float32)
    w3 = std * jax.random.normal(k3, (1, embed_dim), jnp.float32)  # fc_last weight, row form
    b3 = jnp.zeros((1, 1), jnp.float32)
    return (w1, b1, w2, b2, w3, b3)


def reference_forward(x, params):
    w1, b1, w2, b2, w3, b3 = params
    h1 = jax.nn.sigmoid(x @ w1 + b1)
    h2 = jax.nn.sigmoid(h1 @ w2 + b2)
    return h2 @ w3.T + b3


if __name__ == "__main__":
    feature_dim = 32
    embed_dim = 16

    key = jax.random.PRNGKey(0)
    kx, kp = jax.random.split(key)
    params = init_params(kp, feature_dim, embed_dim)

    # Case 1: small batch, single tile.
    x = jax.random.normal(kx, (8, feature_dim), jnp.float32)
    out = jax.block_until_ready(linear_mlp_forward(x, params))
    ref = reference_forward(x, params)
    assert out.shape == (8, 1)
    assert jnp.allclose(out, ref, atol=1e-5, rtol=1e-5)

    # Case 2: batch not a multiple of the tile + multi-tile grid (padding +
    # lane-dense multi-step output path).
    x2 = jax.random.normal(kx, (40, feature_dim), jnp.float32)
    out2 = jax.block_until_ready(linear_mlp_forward(x2, params, block_m=16))
    ref2 = reference_forward(x2, params)
    assert out2.shape == (40, 1)
    assert jnp.allclose(out2, ref2, atol=1e-5, rtol=1e-5)

    # Case 3: bf16 input/weight stream with f32 accumulation (looser tolerance).
    out3 = jax.block_until_ready(
        linear_mlp_forward(x2, params, block_m=16, compute_dtype=jnp.bfloat16))
    assert jnp.allclose(out3, ref2, atol=5e-3, rtol=5e-2)

    print("KERNEL_OK")
</pallas_src>

<mosaic_0001>
module attributes {stable_mosaic.version = 11 : i64} {
  func.func @_mlp_kernel(%arg0: i32, %arg1: memref<8x32xf32, #tpu.memory_space<vmem>>, %arg2: memref<32x32xf32, #tpu.memory_space<vmem>>, %arg3: memref<1x32xf32, #tpu.memory_space<vmem>>, %arg4: memref<32x16xf32, #tpu.memory_space<vmem>>, %arg5: memref<1x16xf32, #tpu.memory_space<vmem>>, %arg6: memref<1x16xf32, #tpu.memory_space<vmem>>, %arg7: memref<1x1xf32, #tpu.memory_space<vmem>>, %arg8: memref<1x8xf32, #tpu.memory_space<vmem>>) attributes {dimension_semantics = [#tpu.dimension_semantics<parallel>], iteration_bounds = array<i64: 1>, scalar_prefetch = 0 : i64, scratch_operands = 0 : i64, tpu.core_type = #tpu.core_type<tc>, window_params = [{transform_indices = @transform_0, window_bounds = array<i64: 8, 32>}, {pipeline_mode = #tpu.pipeline_mode<synchronous>, transform_indices = @transform_1, window_bounds = array<i64: 32, 32>}, {pipeline_mode = #tpu.pipeline_mode<synchronous>, transform_indices = @transform_2, window_bounds = array<i64: 1, 32>}, {pipeline_mode = #tpu.pipeline_mode<synchronous>, transform_indices = @transform_3, window_bounds = array<i64: 32, 16>}, {pipeline_mode = #tpu.pipeline_mode<synchronous>, transform_indices = @transform_4, window_bounds = array<i64: 1, 16>}, {pipeline_mode = #tpu.pipeline_mode<synchronous>, transform_indices = @transform_5, window_bounds = array<i64: 1, 16>}, {pipeline_mode = #tpu.pipeline_mode<synchronous>, transform_indices = @transform_6, window_bounds = array<i64: 1, 1>}, {transform_indices = @transform_7, window_bounds = array<i64: 1, 8>}]} {
    %c0 = arith.constant 0 : index
    %c0_0 = arith.constant 0 : index
    %0 = vector.load %arg1[%c0, %c0_0] : memref<8x32xf32, #tpu.memory_space<vmem>>, vector<8x32xf32>
    %c0_1 = arith.constant 0 : index
    %c0_2 = arith.constant 0 : index
    %1 = vector.load %arg2[%c0_1, %c0_2] : memref<32x32xf32, #tpu.memory_space<vmem>>, vector<32x32xf32>
    %cst = arith.constant dense<0.000000e+00> : vector<8x32xf32>
    %2 = tpu.matmul %0, %1, %cst {dimension_numbers = #tpu.dot_dimension_numbers<[1], [0], [0], [1], [0, 0, 1, 1], [], []>} : vector<8x32xf32>, vector<32x32xf32>, vector<8x32xf32> -> vector<8x32xf32>
    %c0_3 = arith.constant 0 : index
    %c0_4 = arith.constant 0 : index
    %3 = vector.load %arg3[%c0_3, %c0_4] : memref<1x32xf32, #tpu.memory_space<vmem>>, vector<1x32xf32>
    %4 = vector.broadcast %3 : vector<1x32xf32> to vector<8x32xf32>
    %5 = arith.addf %2, %4 : vector<8x32xf32>
    %6 = arith.negf %5 : vector<8x32xf32>
    %7 = math.exp %6 : vector<8x32xf32>
    %cst_5 = arith.constant 1.000000e+00 : f32
    %8 = vector.broadcast %cst_5 : f32 to vector<8x32xf32>
    %9 = arith.addf %8, %7 : vector<8x32xf32>
    %10 = arith.divf %8, %9 : vector<8x32xf32>
    %c0_6 = arith.constant 0 : index
    %c0_7 = arith.constant 0 : index
    %11 = vector.load %arg4[%c0_6, %c0_7] : memref<32x16xf32, #tpu.memory_space<vmem>>, vector<32x16xf32>
    %cst_8 = arith.constant dense<0.000000e+00> : vector<8x16xf32>
    %12 = tpu.matmul %10, %11, %cst_8 {dimension_numbers = #tpu.dot_dimension_numbers<[1], [0], [0], [1], [0, 0, 1, 1], [], []>} : vector<8x32xf32>, vector<32x16xf32>, vector<8x16xf32> -> vector<8x16xf32>
    %c0_9 = arith.constant 0 : index
    %c0_10 = arith.constant 0 : index
    %13 = vector.load %arg5[%c0_9, %c0_10] : memref<1x16xf32, #tpu.memory_space<vmem>>, vector<1x16xf32>
    %14 = vector.broadcast %13 : vector<1x16xf32> to vector<8x16xf32>
    %15 = arith.addf %12, %14 : vector<8x16xf32>
    %16 = arith.negf %15 : vector<8x16xf32>
    %17 = math.exp %16 : vector<8x16xf32>
    %cst_11 = arith.constant 1.000000e+00 : f32
    %18 = vector.broadcast %cst_11 : f32 to vector<8x16xf32>
    %19 = arith.addf %18, %17 : vector<8x16xf32>
    %20 = arith.divf %18, %19 : vector<8x16xf32>
    %c0_12 = arith.constant 0 : index
    %c0_13 = arith.constant 0 : index
    %21 = vector.load %arg6[%c0_12, %c0_13] : memref<1x16xf32, #tpu.memory_space<vmem>>, vector<1x16xf32>
    %22 = vector.broadcast %21 : vector<1x16xf32> to vector<8x16xf32>
    %23 = arith.mulf %20, %22 : vector<8x16xf32>
    %cst_14 = arith.constant dense<0.000000e+00> : vector<8xf32>
    %24 = vector.multi_reduction <add>, %23, %cst_14 [1] : vector<8x16xf32> to vector<8xf32>
    %25 = vector.shape_cast %24 : vector<8xf32> to vector<1x8xf32>
    %c0_15 = arith.constant 0 : index
    %c0_16 = arith.constant 0 : index
    %26 = vector.load %arg7[%c0_15, %c0_16] : memref<1x1xf32, #tpu.memory_space<vmem>>, vector<1x1xf32>
    %27 = vector.broadcast %26 : vector<1x1xf32> to vector<1x8xf32>
    %28 = arith.addf %25, %27 : vector<1x8xf32>
    %c0_17 = arith.constant 0 : index
    %c0_18 = arith.constant 0 : index
    %29 = vector.load %arg8[%c0_17, %c0_18] : memref<1x8xf32, #tpu.memory_space<vmem>>, vector<1x8xf32>
    tpu.vector_store %arg8[%c0_17, %c0_18], %28 {strides = array<i32>} : memref<1x8xf32, #tpu.memory_space<vmem>>, vector<1x8xf32>,
    return
  }
  func.func @transform_0(%arg0: i32) -> (i32, i32) {
    %c0_i32 = arith.constant 0 : i32
    %c0_i32_0 = arith.constant 0 : i32
    return %arg0, %c0_i32 : i32, i32
  }
  func.func @transform_1(%arg0: i32) -> (i32, i32) {
    %c0_i32 = arith.constant 0 : i32
    %c0_i32_0 = arith.constant 0 : i32
    %c0_i32_1 = arith.constant 0 : i32
    return %c0_i32, %c0_i32_0 : i32, i32
  }
  func.func @transform_2(%arg0: i32) -> (i32, i32) {
    %c0_i32 = arith.constant 0 : i32
    %c0_i32_0 = arith.constant 0 : i32
    %c0_i32_1 = arith.constant 0 : i32
    return %c0_i32, %c0_i32_0 : i32, i32
  }
  func.func @transform_3(%arg0: i32) -> (i32, i32) {
    %c0_i32 = arith.constant 0 : i32
    %c0_i32_0 = arith.constant 0 : i32
    %c0_i32_1 = arith.constant 0 : i32
    return %c0_i32, %c0_i32_0 : i32, i32
  }
  func.func @transform_4(%arg0: i32) -> (i32, i32) {
    %c0_i32 = arith.constant 0 : i32
    %c0_i32_0 = arith.constant 0 : i32
    %c0_i32_1 = arith.constant 0 : i32
    return %c0_i32, %c0_i32_0 : i32, i32
  }
  func.func @transform_5(%arg0: i32) -> (i32, i32) {
    %c0_i32 = arith.constant 0 : i32
    %c0_i32_0 = arith.constant 0 : i32
    %c0_i32_1 = arith.constant 0 : i32
    return %c0_i32, %c0_i32_0 : i32, i32
  }
  func.func @transform_6(%arg0: i32) -> (i32, i32) {
    %c0_i32 = arith.constant 0 : i32
    %c0_i32_0 = arith.constant 0 : i32
    %c0_i32_1 = arith.constant 0 : i32
    return %c0_i32, %c0_i32_0 : i32, i32
  }
  func.func @transform_7(%arg0: i32) -> (i32, i32) {
    %c0_i32 = arith.constant 0 : i32
    %c0_i32_0 = arith.constant 0 : i32
    return %arg0, %c0_i32 : i32, i32
  }
}

</mosaic_0001>

<bundles_post_ra>
// kernel: tpu_custom_call.1
= control target key start
LH: loop header
LB: loop body
LE: loop exit
PB: predicated region body
PF: predicated region fallthrough
CT: control target
= control target key end

     0   :  { %s445_s0 = inlined_call_operand.vmem [shape: f32[8,32], index: 0, kind: input, shape index: {}]   ;;  %s446_s1 = inlined_call_operand.vmem [shape: f32[32,32], index: 1, kind: input, shape index: {}]   ;;  %s447_s2 = inlined_call_operand.vmem [shape: f32[1,32], index: 2, kind: input, shape index: {}]   ;;  %s448_s3 = inlined_call_operand.vmem [shape: f32[32,16], index: 3, kind: input, shape index: {}]   ;;  %s449_s4 = inlined_call_operand.vmem [shape: f32[1,16], index: 4, kind: input, shape index: {}]   ;;  %s450_s5 = inlined_call_operand.vmem [shape: f32[1,16], index: 5, kind: input, shape index: {}]   ;;  %s451_s6 = inlined_call_operand.<no memory space> [shape: f32[1,1], index: 6, kind: input, shape index: {}]   ;;  %s452_s7 = inlined_call_operand.hbm [shape: f32[1,8], index: 7, kind: output, shape index: {}]  }
   0x1   :  { %v12_v0 = vstv %s451_s6 }
   0x2   :  { %13 = vst [vmem:[#allocation2] sm:$0x1] %v12_v0 }
   0x3   :  { %v30_v1 = vld [vmem:[%s446_s1] sm:$0xff]  ;;  %v31_v2 = vld [vmem:[%s446_s1 + $0x8] sm:$0xff]  ;;  %v32_v3 = vld [vmem:[%s446_s1 + $0x10] sm:$0xff]  ;;  %v347_v4 = vmov 0.0|0.0   ;;  %vm348_vm0 = vmmov 0   ;;  %v349_v7 = vmov 0.0  }
   0x4   :  { %297 = vmatprep.subr.bf16.mxu0 %v347_v4  ;;  %v298_v5 = vpack.c.bf16 %v31_v2, %v30_v1  ;;  %v33_v6 = vld [vmem:[%s446_s1 + $0x18] sm:$0xff]  ;;  %283 = vmatprep.mubr.msk.f32.mxu0 %vm348_vm0, %v349_v7 }
   0x5   :  { %303 = vmatprep.subr.bf16.mxu1 %v347_v4  ;;  %294 = vmatprep.mubr.msk.f32.mxu1 %vm348_vm0, %v349_v7 }
   0x6   :  { %14 = vsyncpa [#allocation4], 0  ;;  %299 = vmatpush3.bf16.msra.mxu0 %v298_v5  ;;  %v301_v8 = vpack.c.bf16 %v33_v6, %v32_v3  ;;  %v29_v9 = vld [vmem:[%s445_s0] sm:$0xff]  ;;  %vm41_vm1 = vcmask 261120   ;;  %v122_v11 = vld [vmem:[%s448_s3 + $0x8] sm:$0xff]  ;;  %v350_v24 = vmov 0   ;;  %v229_v37 = vlaneseq }
   0x7   :  { %300 = vmatprep.subr.bf16.mxu0 %v347_v4  ;;  %v121_v10 = vld [vmem:[%s448_s3] sm:$0xff]  ;;  %v123_v12 = vld [vmem:[%s448_s3 + $0x10] sm:$0xff]  ;;  %v124_v14 = vld [vmem:[%s448_s3 + $0x18] sm:$0xff]  ;;  %314 = vset.pattern.permute.xlu0 %v350_v24  ;;  %vm219_vm2 = vcmask 130048   ;;  %vm242_vm3 = vcmask 57344  }
   0x8   :  { %v304_v13 = vpack.c.bf16 %v122_v11, %v121_v10  ;;  %v307_v15 = vpack.c.bf16 %v124_v14, %v123_v12  ;;  %v258_v16 = vld [vmem:[%s447_s2] ss:$0 sm:$0xff]  ;;  %v230_v38 = vshrl.u32 %v229_v37, 7  ;;  %v236_v41 = vand.u32 127, %v229_v37 }
   0x9   :  { %v261_v25 = vld [vmem:[%s449_s4] ss:$0 sm:$0xff]  ;;  %s351_s4 = smov [#allocation3]  }
   0xa   :  { %302 = vmatpush3.bf16.msra.mxu0 %v301_v8  ;;  %305 = vmatpush3.bf16.msra.mxu1 %v304_v13  ;;  %v264_v32 = vld [vmem:[%s450_s5] ss:$0 sm:$0xff]  ;;  %v231_v40 = vsub.s32 0, %v230_v38  ;;  %v239_v44 = vsub.s32 %v236_v41, %v230_v38  ;;  %s250_s22 = sshll.u32 %s351_s4, 4  ;;  %s251_s22 = int_to_ptr.vmem [resolvable:$true] %s250_s22 }
   0xb   :  { %306 = vmatprep.subr.bf16.mxu1 %v347_v4  ;;  %v223_v36 = vld [vmem:[#allocation2] sm:$0x1]  ;;  %s323_s5 = scalar_lea.vmem %s251_s22, 16  ;;  %s327_s23 = scalar_lea.vmem %s251_s22, 32 }
   0xc   :  { %p324_p0 = scmp.ne.s32.totalorder %s251_s22, %s323_s5  ;;  %p328_p1 = scmp.lt.s32.totalorder %s251_s22, %s251_s22 }
   0xd   :  { %284 = vmatmul.mubr.msk.f32.vlgmr.msra.gmra.mrb[0].mxu0 %vm41_vm1, %v29_v9  ;;  %p329_p2 = scmp.lt.s32.totalorder %s327_s23, %s323_s5 }
   0xe   :  { %308 = vmatpush3.bf16.msra.mxu1 %v307_v15 }
   0xf   :  { %p330_p3 = por %p329_p2, %p328_p1 }
  0x11   :  { %p331_p4 = pnand %p330_p3, %p324_p0 }
  0xe0   :  { %v111_v17 = vpop.f32.mrb[0].mxu0 }
  0xe1   :  { %v112_v18 = vadd.f32 %v258_v16, %v111_v17  ;;  %v285_v19 = vpop.f32.mrb[1].mxu0 }
  0xe3   :  { %v260_v20 = vmul.f32 -1.442695, %v112_v18 }
  0xe5   :  { %315 = vpow2.f32 %v260_v20 }
  0xef   :  { %v316_v21 = vpop.eup %315 }
  0xf0   :  { %v118_v22 = vadd.f32 1.0, %v316_v21 }
  0xf2   :  { %317 = vrcp.f32 %v118_v22 }
  0xfc   :  { %v318_v23 = vpop.eup %317 }
  0xfd   :  { %295 = vmatmul.mubr.msk.f32.vlgmr.msra.gmra.mrb[0].mxu1 %vm41_vm1, %v318_v23 }
 0x1d0   :  { %v201_v26 = vpop.f32.mrb[0].mxu1 }
 0x1d1   :  { %v202_v27 = vadd.f32 %v261_v25, %v201_v26  ;;  %v296_v28 = vpop.f32.mrb[1].mxu1 }
 0x1d3   :  { %v263_v29 = vmul.f32 -1.442695, %v202_v27 }
 0x1d5   :  { %319 = vpow2.f32 %v263_v29 }
 0x1df   :  { %v320_v30 = vpop.eup %319 }
 0x1e0   :  { %v208_v31 = vadd.f32 1.0, %v320_v30 }
 0x1e2   :  { %321 = vrcp.f32 %v208_v31 }
 0x1ec   :  { %v322_v33 = vpop.eup %321 }
 0x1ed   :  { %v218_v34 = vmul.f32 %v322_v33, %v264_v32 }
 0x1ef   :  { %v220_v35 = vsel %vm219_vm2, %v218_v34, 0.0 }
 0x1f0   :  { %221 = vadd.xlane.f32.xlu0 %v220_v35 }
 0x206   :  { %226 = vperm.xlu0 %314, %v223_v36  }
 0x27d   :  { %v222_v39 = vpop.xlane.xlu0 %221 }
 0x285   :  { %v227_v42 = vpop.permute.xlu0 %226 }
 0x286   :  { %v232_v43 = vrot.slane %v227_v42, %v231_v40 }
 0x288   :  { %v233_v45 = vadd.f32 %v232_v43, %v222_v39 }
 0x28a   :  { %v240_v46 = vrot.slane %v233_v45, %v239_v44 }
 0x28c   :  { %243 = vst.msk [vmem:[#allocation3] sm:$0x1] %vm242_vm3, %v240_v46 }
 0x28d   :  { %334 = shalt.err (!%p331_p4)
}
 0x28e   :  { %s335_s26 = scalar_lea.hbm %s452_s7, 16 }
 0x28f   :  { %p336_p5 = scmp.ne.s32.totalorder %s452_s7, %s335_s26  ;;  %p339_p6 = scmp.lt.u32.totalorder %s335_s26, %s452_s7 }
 0x291   :  { %p341_p7 = pnand %p339_p6, %p336_p5 }
 0x293   :  { %344 = shalt.err (!%p341_p7)
}
 0x294   :  { %253 = dma.vmem_to_hbm [thread:$0]  %s251_s22, 16, %s452_s7, [#allocation4]  }
 0x295   :  { %345 = dma.done.wait [#allocation4], 16  }
 0x296   :  { %346 = vsyncadd [#allocation4], 4294967280 }
 0x297   :  { %257 = vsyncpa [#allocation4], 1 }

</bundles_post_ra>
